<compile_context>
chip_gen: v7x
topology: tpu7x:2x2x1
jax: 0.10.0
libtpu: 0.0.40
codegen_flags: <defaults>
</compile_context>

<pallas_src>
import functools
import numpy as np
import jax
import jax.numpy as jnp
from jax import lax
from jax.experimental import pallas as pl
from jax.experimental.pallas import tpu as pltpu


# ----------------------------- Pallas kernel ------------------------------ #
def _quantization_kernel(a_ref, c_ref, cb_ref, x_ref, o_ref, *, bf16_compute):
    """out = sum_i a[i] * tanh(c[i] * x - c[i]*b[i]); f32 accumulation."""
    k1 = a_ref.shape[0]                          # static (K - 1)
    compute_dtype = jnp.bfloat16 if bf16_compute else jnp.float32

    x_in = x_ref[...]                            # tile in the caller's dtype
    xc = x_in if x_in.dtype == compute_dtype else x_in.astype(compute_dtype)

    def term(i):
        # SMEM scalar reads; c*b was folded on the host (scalar ALU side).
        c_i = c_ref[i].astype(compute_dtype)
        cb_i = cb_ref[i].astype(compute_dtype)
        a_i = a_ref[i].astype(compute_dtype)
        t = jnp.tanh(c_i * xc - cb_i)            # EUP transcendental
        return (a_i * t).astype(jnp.float32)     # accumulate in f32

    if k1 <= 8:
        # Small K (the common case, K-1 == 3): static unroll.
        acc = term(0)                            # init with i=0 term, no zeros pass
        for i in range(1, k1):
            acc = acc + term(i)
    else:
        # Large K: bounded live ranges via a rolled loop with small unroll.
        acc = lax.fori_loop(1, k1, lambda i, s: s + term(i), term(0), unroll=2)

    o_ref[...] = acc.astype(o_ref.dtype)


# ------------------------------ Wrapper ----------------------------------- #
def quantization_forward(x, a, b, c, *, bf16_compute=False, out_dtype=None,
                         target_tile_bytes=2 * 1024 * 1024):
    """x: any shape; a, b, c: (K-1,).  Returns array of x.shape in out_dtype
    (defaults to x.dtype).  No host-side pad/copy or up-cast of x."""
    orig_shape = x.shape
    in_dtype = x.dtype
    out_dtype = in_dtype if out_dtype is None else out_dtype
    itemsize = x.dtype.itemsize
    row_align = max(8, 32 // itemsize)           # native sublane multiple: 8/16/32
    n_total = int(np.prod(orig_shape)) if len(orig_shape) else 1
    k1 = int(a.shape[0])

    a32 = a.astype(jnp.float32)
    c32 = c.astype(jnp.float32)
    cb32 = c32 * b.astype(jnp.float32)           # fold c*b once on the host

    # ---- Tiling with no host-side pad/copy ---------------------------------
    lanes = orig_shape[-1] if len(orig_shape) >= 2 else 0
    use_2d = (len(orig_shape) >= 2 and lanes % 128 == 0
              and lanes * 4 * row_align <= 4 * target_tile_bytes)

    if use_2d:
        rows = n_total // lanes
        x_view = x.reshape(rows, lanes)          # free contiguous collapse
        if rows <= row_align:
            tile_rows = rows                     # single full block
        else:
            max_tile_rows = max(
                row_align,
                (target_tile_bytes // (lanes * 4)) // row_align * row_align)
            tile_rows = min(max_tile_rows, (rows // row_align) * row_align)
            if rows >= 2 * row_align:
                # Guarantee >= 2 grid steps: v7x dual-TC sharding + DMA overlap.
                half = max(row_align, (pl.cdiv(rows, 2) // row_align) * row_align)
                tile_rows = min(tile_rows, half)
            tile_rows = max(row_align, tile_rows)
        block_shape = (tile_rows, lanes)
        grid = (pl.cdiv(rows, tile_rows),)       # last block may be partial
        index_map = lambda i: (i, 0)
        view_shape = (rows, lanes)
    else:
        # Ragged last dim: flatten to a 1-D lane stream (no jnp.pad); the last
        # grid block may be partial -- Pallas masks the out-of-bounds writes.
        x_view = x.reshape(-1)
        lane_align = 128 * row_align
        max_tile = max(lane_align,
                       (target_tile_bytes // 4) // lane_align * lane_align)
        tile_n = n_total if n_total <= max_tile else max_tile
        block_shape = (tile_n,)
        grid = (pl.cdiv(n_total, tile_n),)
        index_map = lambda i: (i,)
        view_shape = (n_total,)

    # ---- VMEM budget: ~10x f32-equivalent tile, capped per generation ------
    tile_f32_bytes = int(np.prod(block_shape)) * 4
    try:
        vmem_cap = int(pltpu.get_tpu_info().vmem_capacity_bytes)
    except Exception:
        vmem_cap = 64 * 1024 * 1024              # conservative (v7x physical)
    vmem_limit = int(min(0.75 * vmem_cap,
                         max(32 * 1024 * 1024, 10 * tile_f32_bytes)))

    cost = pl.CostEstimate(
        flops=4 * k1 * n_total,
        transcendentals=k1 * n_total,
        bytes_accessed=n_total * (itemsize + np.dtype(out_dtype).itemsize),
    )

    kernel = functools.partial(_quantization_kernel, bf16_compute=bf16_compute)
    out_view = pl.pallas_call(
        kernel,
        out_shape=jax.ShapeDtypeStruct(view_shape, out_dtype),
        grid_spec=pltpu.PrefetchScalarGridSpec(
            num_scalar_prefetch=0,
            grid=grid,
            in_specs=[
                pl.BlockSpec(memory_space=pltpu.MemorySpace.SMEM),  # a
                pl.BlockSpec(memory_space=pltpu.MemorySpace.SMEM),  # c
                pl.BlockSpec(memory_space=pltpu.MemorySpace.SMEM),  # c*b
                pl.BlockSpec(block_shape, index_map),               # x tile
            ],
            out_specs=pl.BlockSpec(block_shape, index_map),
        ),
        compiler_params=pltpu.CompilerParams(
            dimension_semantics=("parallel",),
            vmem_limit_bytes=vmem_limit,
        ),
        cost_estimate=cost,
    )(a32, c32, cb32, x_view)

    return out_view.reshape(orig_shape)


# -------------------- Deterministic parameter construction ---------------- #
def make_quantization_params(num_code_words, max_labels, max_samples):
    """Mirrors QuantizationLayer.__init__ (numpy, then cast to f32)."""
    k1 = num_code_words - 1
    a = np.ones(k1) * max_labels / num_code_words
    b = np.linspace(-1.0, 1.0, k1) * max_samples
    if k1 > 1:
        c = 15.0 / np.mean(np.diff(b)) * np.ones(k1)
    else:
        # TODO(synk): mirrors a latent bug in the PyTorch module -- int() truncation
        # divides by zero whenever |max_samples| < 1.
        c = 15.0 / int(b[0]) * np.ones(k1)
    return (jnp.asarray(a, jnp.float32),
            jnp.asarray(b, jnp.float32),
            jnp.asarray(c, jnp.float32))


# ------------------------------- Main -------------------------------------- #
if __name__ == "__main__":
    num_code_words = 4
    max_labels = 10.0
    max_samples = 1.0
    a, b, c = make_quantization_params(num_code_words, max_labels, max_samples)

    def reference(x):
        xf = x.astype(jnp.float32)
        return jnp.sum(
            a[:, None, None] * jnp.tanh(c[:, None, None] * (xf[None] - b[:, None, None])),
            axis=0)

    key = jax.random.PRNGKey(0)
    kk1, kk2, kk3 = jax.random.split(key, 3)

    # 1) Lane-aligned case with a multi-step grid and a partial last block.
    x1 = jax.random.normal(kk1, (20, 256), dtype=jnp.float32)
    out1 = jax.block_until_ready(quantization_forward(x1, a, b, c))
    assert out1.shape == x1.shape and out1.dtype == x1.dtype
    assert jnp.allclose(out1, reference(x1), atol=2e-4, rtol=2e-4), "mismatch (aligned)"

    # 2) Ragged case -> flattened 1-D lane stream, no host-side pad/copy.
    x2 = jax.random.normal(kk2, (13, 200), dtype=jnp.float32)
    out2 = jax.block_until_ready(quantization_forward(x2, a, b, c))
    assert jnp.allclose(out2, reference(x2), atol=2e-4, rtol=2e-4), "mismatch (ragged)"

    # 3) bf16 activations stay bf16 end-to-end (f32 math inside the kernel).
    x3 = jax.random.normal(kk3, (32, 128), dtype=jnp.bfloat16)
    out3 = jax.block_until_ready(quantization_forward(x3, a, b, c))
    assert out3.dtype == jnp.bfloat16
    assert jnp.allclose(out3.astype(jnp.float32), reference(x3),
                        atol=5e-2, rtol=5e-2), "mismatch (bf16)"

    print("KERNEL_OK")
</pallas_src>

<mosaic_0001>
module attributes {stable_mosaic.version = 11 : i64} {
  func.func @_quantization_kernel(%arg0: i32, %arg1: memref<3xf32, #tpu.memory_space<smem>>, %arg2: memref<3xf32, #tpu.memory_space<smem>>, %arg3: memref<3xf32, #tpu.memory_space<smem>>, %arg4: memref<8x256xf32, #tpu.memory_space<vmem>>, %arg5: memref<8x256xf32, #tpu.memory_space<vmem>>) attributes {dimension_semantics = [#tpu.dimension_semantics<parallel>], iteration_bounds = array<i64: 3>, scalar_prefetch = 0 : i64, scratch_operands = 0 : i64, tpu.core_type = #tpu.core_type<tc>, window_params = [{transform_indices = @transform_0, window_bounds = array<i64: 3>}, {transform_indices = @transform_1, window_bounds = array<i64: 3>}, {transform_indices = @transform_2, window_bounds = array<i64: 3>}, {transform_indices = @transform_3, window_bounds = array<i64: 8, 256>}, {transform_indices = @transform_4, window_bounds = array<i64: 8, 256>}]} {
    %c0 = arith.constant 0 : index
    %c0_0 = arith.constant 0 : index
    %0 = vector.load %arg4[%c0, %c0_0] : memref<8x256xf32, #tpu.memory_space<vmem>>, vector<8x256xf32>
    %c0_1 = arith.constant 0 : index
    %1 = memref.load %arg2[%c0_1] : memref<3xf32, #tpu.memory_space<smem>>
    %c0_2 = arith.constant 0 : index
    %2 = memref.load %arg3[%c0_2] : memref<3xf32, #tpu.memory_space<smem>>
    %c0_3 = arith.constant 0 : index
    %3 = memref.load %arg1[%c0_3] : memref<3xf32, #tpu.memory_space<smem>>
    %4 = vector.broadcast %1 : f32 to vector<8x256xf32>
    %5 = arith.mulf %4, %0 : vector<8x256xf32>
    %6 = vector.broadcast %2 : f32 to vector<8x256xf32>
    %7 = arith.subf %5, %6 : vector<8x256xf32>
    %8 = math.tanh %7 : vector<8x256xf32>
    %9 = vector.broadcast %3 : f32 to vector<8x256xf32>
    %10 = arith.mulf %9, %8 : vector<8x256xf32>
    %c1 = arith.constant 1 : index
    %11 = memref.load %arg2[%c1] : memref<3xf32, #tpu.memory_space<smem>>
    %c1_4 = arith.constant 1 : index
    %12 = memref.load %arg3[%c1_4] : memref<3xf32, #tpu.memory_space<smem>>
    %c1_5 = arith.constant 1 : index
    %13 = memref.load %arg1[%c1_5] : memref<3xf32, #tpu.memory_space<smem>>
    %14 = vector.broadcast %11 : f32 to vector<8x256xf32>
    %15 = arith.mulf %14, %0 : vector<8x256xf32>
    %16 = vector.broadcast %12 : f32 to vector<8x256xf32>
    %17 = arith.subf %15, %16 : vector<8x256xf32>
    %18 = math.tanh %17 : vector<8x256xf32>
    %19 = vector.broadcast %13 : f32 to vector<8x256xf32>
    %20 = arith.mulf %19, %18 : vector<8x256xf32>
    %21 = arith.addf %10, %20 : vector<8x256xf32>
    %c2 = arith.constant 2 : index
    %22 = memref.load %arg2[%c2] : memref<3xf32, #tpu.memory_space<smem>>
    %c2_6 = arith.constant 2 : index
    %23 = memref.load %arg3[%c2_6] : memref<3xf32, #tpu.memory_space<smem>>
    %c2_7 = arith.constant 2 : index
    %24 = memref.load %arg1[%c2_7] : memref<3xf32, #tpu.memory_space<smem>>
    %25 = vector.broadcast %22 : f32 to vector<8x256xf32>
    %26 = arith.mulf %25, %0 : vector<8x256xf32>
    %27 = vector.broadcast %23 : f32 to vector<8x256xf32>
    %28 = arith.subf %26, %27 : vector<8x256xf32>
    %29 = math.tanh %28 : vector<8x256xf32>
    %30 = vector.broadcast %24 : f32 to vector<8x256xf32>
    %31 = arith.mulf %30, %29 : vector<8x256xf32>
    %32 = arith.addf %21, %31 : vector<8x256xf32>
    %c0_8 = arith.constant 0 : index
    %c0_9 = arith.constant 0 : index
    %33 = vector.load %arg5[%c0_8, %c0_9] : memref<8x256xf32, #tpu.memory_space<vmem>>, vector<8x256xf32>
    tpu.vector_store %arg5[%c0_8, %c0_9], %32 {strides = array<i32>} : memref<8x256xf32, #tpu.memory_space<vmem>>, vector<8x256xf32>,
    return
  }
  func.func @transform_0(%arg0: i32) -> i32 {
    %c0_i32 = arith.constant 0 : i32
    %c0_i32_0 = arith.constant 0 : i32
    return %c0_i32 : i32
  }
  func.func @transform_1(%arg0: i32) -> i32 {
    %c0_i32 = arith.constant 0 : i32
    %c0_i32_0 = arith.constant 0 : i32
    return %c0_i32 : i32
  }
  func.func @transform_2(%arg0: i32) -> i32 {
    %c0_i32 = arith.constant 0 : i32
    %c0_i32_0 = arith.constant 0 : i32
    return %c0_i32 : i32
  }
  func.func @transform_3(%arg0: i32) -> (i32, i32) {
    %c0_i32 = arith.constant 0 : i32
    %c0_i32_0 = arith.constant 0 : i32
    return %arg0, %c0_i32 : i32, i32
  }
  func.func @transform_4(%arg0: i32) -> (i32, i32) {
    %c0_i32 = arith.constant 0 : i32
    %c0_i32_0 = arith.constant 0 : i32
    return %arg0, %c0_i32 : i32, i32
  }
}

</mosaic_0001>

<bundles_post_ra>
// kernel: tpu_custom_call.1
= control target key start
LH: loop header
LB: loop body
LE: loop exit
PB: predicated region body
PF: predicated region fallthrough
CT: control target
= control target key end

     0   :  { %9 = vsyncpa [#allocation5], 0  ;;  %s946_s0 = inlined_call_operand.hbm [shape: f32[3], index: 0, kind: input, shape index: {}]   ;;  %s947_s1 = inlined_call_operand.vmem [shape: f32[3], index: 1, kind: input, shape index: {}]   ;;  %s948_s2 = inlined_call_operand.vmem [shape: f32[3], index: 2, kind: input, shape index: {}]   ;;  %s949_s3 = inlined_call_operand.hbm [shape: f32[20,256], index: 3, kind: input, shape index: {}]   ;;  %s950_s4 = inlined_call_operand.hbm [shape: f32[20,256], index: 4, kind: output, shape index: {}]  }
   0x1   :  { %10 = vsyncpa [#allocation6], 0 }
   0x2   :  { %11 = vsyncpa [#allocation9], 0 }
   0x3   :  { %12 = vsyncpa [#allocation3], 0 }
   0x4   :  { %14 = vsyncpa [#allocation3 + $0x1], 0 }
   0x5   :  { %15 = vsyncpa [#allocation4], 0 }
   0x6   :  { %17 = vsyncpa [#allocation4 + $0x1], 0  ;;  %s721_s15 = smov 0   ;;  %s723_s16 = smov 0  }
   0x7   :  { %s725_s17 = smov 0   ;;  %s727_s18 = smov 0  }
   0x8 LB: > { %s742_s19 = sadd.s32 4294967295, %s689_s18   ;;  %s421_s20 = sadd.s32 4294967294, %s689_s18   ;;  %s689_s18 = sphi %s727_s18, %s973_s18   ;;  %s685_s17 = sphi %s725_s17, %s972_s17   ;;  %s681_s16 = sphi %s723_s16, %s971_s16   ;;  %s677_s15 = sphi %s721_s15, %s970_s15  }
   0x9   : > { %p106_p0 = scmp.ne.s32.totalorder %s681_s16, %s677_s15  ;;  %p951_p1 = scmp.eq.s32.totalorder %s742_s19, 0 }
   0xa   : > { %p136_p3 = scmp.eq.s32.totalorder %s421_s20, 2  ;;  %p422_p5 = scmp.ge.s32.totalorder %s689_s18, 1 }
   0xb   : > { %p751_p4 = por %p951_p1, %p106_p0  ;;  %p143_p7 = scmp.lt.s32.totalorder %s689_s18, 4 }
   0xc   : > { %p756_p6 = por %p136_p3, %p106_p0  ;;  %s165_s26 = sshll.u32 %s947_s1, 4  ;;  %s166_s26 = int_to_ptr.vmem [resolvable:$true] %s165_s26 }
   0xd   : > { %s954_s21 = scalar_select %p751_p4, 1, 0 }
   0xe   : > { %s955_s22 = scalar_select %p756_p6, 1, 0 }
   0xf   : > { %p761_p8 = pnand %p422_p5, %p143_p7  ;;  %s176_s29 = sshll.u32 %s948_s2, 4  ;;  %s779_s29 = int_to_ptr.vmem [resolvable:$true] %s176_s29 }
  0x10   : > { %s782_s5 = sadd.s32 1, %s689_s18   ;;  %s538_s8 = scalar_lea.hbm %s946_s0, 16 }
  0x11   : > { %p465_p9 = pneg %p761_p8  ;;  %p539_p11 = scmp.ne.s32.totalorder %s946_s0, %s538_s8 }
  0x12   : > { %p545_p3 = scmp.lt.u32.totalorder %s538_s8, %s946_s0 }
  0x13   : > { %p775_p10 = pnand %p465_p9, %p951_p1 }
  0x15   : > { %p540_p12 = pneg %p775_p10 }
  0x17   : > { %p541_p13 = pnand %p540_p12, %p539_p11 }
  0x19   : > { %p542_p0 = pneg %p541_p13 }
  0x1b   : > { %p547_p5 = pnand %p545_p3, %p542_p0 }
  0x1d   : > { %550 = shalt.err (!%p547_p5)
}
  0x1e   : > { %s691_s13 = smov [#allocation2]   ;;  %s551_s24 = scalar_lea.vmem %s166_s26, 16 }
  0x1f   : > { %468 = dma.hbm_to_smem (!%p775_p10), %s946_s0, 16, %s691_s13, [#allocation5]  }
  0x20   : > { %p552_p7 = scmp.ne.s32.totalorder %s166_s26, %s551_s24  ;;  %p559_p13 = scmp.lt.s32.totalorder %s166_s26, %s166_s26 }
  0x21   : > { %p560_p1 = scmp.lt.s32.totalorder %s551_s24, %s551_s24 }
  0x22   : > { %p554_p9 = pnand %p552_p7, %p540_p12 }
  0x23   : > { %p561_p2 = por %p560_p1, %p559_p13 }
  0x24   : > { %p555_p11 = pneg %p554_p9 }
  0x26   : > { %p562_p6 = pnand %p561_p2, %p555_p11 }
  0x28   : > { %565 = shalt.err (!%p562_p6)
}
  0x29   : > { %s692_s25 = smov [#allocation7]   ;;  %s566_s27 = scalar_lea.vmem %s779_s29, 16 }
  0x2a   : > { %471 = dma.vmem_to_smem (!%p775_p10), %s166_s26, 16, %s692_s25, [#allocation6]  }
  0x2b   : > { %p567_p0 = scmp.ne.s32.totalorder %s779_s29, %s566_s27  ;;  %p574_p7 = scmp.lt.s32.totalorder %s779_s29, %s779_s29 }
  0x2c   : > { %p575_p9 = scmp.lt.s32.totalorder %s566_s27, %s566_s27 }
  0x2d   : > { %p569_p3 = pnand %p567_p0, %p540_p12 }
  0x2e   : > { %p576_p1 = por %p575_p9, %p574_p7 }
  0x2f   : > { %p570_p5 = pneg %p569_p3 }
  0x31   : > { %p577_p2 = pnand %p576_p1, %p570_p5 }
  0x33   : > { %580 = shalt.err (!%p577_p2)
}
  0x34   : > { %s693_s28 = smov [#allocation8]   ;;  %s90_s26 = ssub.s32 %s689_s18, %s782_s5 }
  0x35   : > { %474 = dma.vmem_to_smem (!%p775_p10), %s779_s29, 16, %s693_s28, [#allocation9]  }
  0x36   : > { %s93_s6 = sadd.s32 1, %s685_s17  ;;  %p91_p6 = scmp.eq.s32.totalorder %s90_s26, 0 }
  0x37   : > { %p100_p12 = scmp.ne.s32.totalorder %s685_s17, %s681_s16  ;;  %p101_p11 = scmp.eq.s32.totalorder %s689_s18, 0 }
  0x38   : > { %p486_p13 = scmp.lt.s32.totalorder %s689_s18, 3  ;;  %p958_p3 = scmp.eq.s32.totalorder %s742_s19, 2 }
  0x39   : > { %s826_s30 = scalar_select %p91_p6, %s685_s17, %s93_s6  }
  0x3a   : > { %p102_p0 = por %p101_p11, %p100_p12  ;;  %p830_p5 = por %p958_p3, %p100_p12 }
  0x3b   : > { %s187_s8 = sand.u32 1, %s685_s17   ;;  %s447_s9 = sshll.u32 %s689_s18, 8 }
  0x3c   : > { %s959_s7 = scalar_select %p830_p5, 1, 0 }
  0x3d   : > { %s427_s10 = sshll.u32 %s187_s8, 4  ;;  %s839_s29 = scalar_lea.hbm %s949_s3, %s447_s9 }
  0x3e   : > { %s191_s13 = scalar_lea.vmem [#allocation10], %s427_s10  ;;  %p841_p10 = pnand %p486_p13, %p102_p0 }
  0x3f   : > { %s199_s14 = sshll.u32 %s191_s13, 4  ;;  %s188_s24 = scalar_lea.sflag [#allocation3], %s187_s8  ;;  %s845_s14 = int_to_ptr.vmem [resolvable:$true] %s199_s14 }
  0x40   : > { %s581_s25 = scalar_lea.hbm %s839_s29, 256  ;;  %p583_p9 = pneg %p841_p10 }
  0x41   : > { %p582_p7 = scmp.ne.s32.totalorder %s839_s29, %s581_s25  ;;  %s586_s26 = scalar_lea.hbm %s949_s3, 768 }
  0x42   : > { %p587_p6 = scmp.lt.u32.totalorder %s839_s29, %s949_s3  ;;  %p588_p12 = scmp.lt.u32.totalorder %s586_s26, %s581_s25 }
  0x43   : > { %p584_p1 = pnand %p583_p9, %p582_p7  ;;  %p590_p13 = scmp.lt.u32.totalorder %s581_s25, %s839_s29 }
  0x44   : > { %p589_p11 = por %p588_p12, %p587_p6 }
  0x45   : > { %p585_p2 = pneg %p584_p1 }
  0x46   : > { %p591_p0 = por %p590_p13, %p589_p11 }
  0x48   : > { %p592_p3 = pnand %p591_p0, %p585_p2 }
  0x4a   : > { %595 = shalt.err (!%p592_p3)
}
  0x4b   : > { %s596_s8 = scalar_lea.vmem %s845_s14, 256  ;;  %s694_s10 = smov [#allocation10]  }
  0x4c   : > { %p597_p7 = scmp.ne.s32.totalorder %s845_s14, %s596_s8  ;;  %s601_s11 = sshll.u32 %s694_s10, 4  ;;  %s602_s11 = int_to_ptr.vmem [resolvable:$false] %s601_s11 }
  0x4d   : > { %s603_s12 = scalar_lea.vmem %s602_s11, 512  ;;  %p604_p4 = scmp.lt.s32.totalorder %s845_s14, %s602_s11 }
  0x4e   : > { %p599_p1 = pnand %p597_p7, %p583_p9  ;;  %p605_p6 = scmp.lt.s32.totalorder %s603_s12, %s596_s8 }
  0x50   : > { %p600_p5 = pneg %p599_p1  ;;  %p606_p12 = por %p605_p6, %p604_p4 }
  0x52   : > { %p607_p11 = pnand %p606_p12, %p600_p5 }
  0x54   : > { %610 = shalt.err (!%p607_p11)
}
  0x55   : > { %478 = dma.hbm_to_vmem [thread:$0]  (!%p841_p10), %s839_s29, 256, %s845_s14, %s188_s24  }
  0x56   : > { %208 = sbr.rel (%p761_p8) target bundleno = 153 (0x99), region = 36  ;;  %p961_p9 = scmp.eq.s32.totalorder (!%p761_p8), %s742_s19, 0 }
  0x5d   : > { %656 = dma.done.wait (%p961_p9), [#allocation5], 16   ;;  %p962_p2 = pmov %p961_p9 }
  0x5f   : > { %658 = vsyncadd (%p962_p2), [#allocation5], 4294967280  ;;  %p963_p13 = pmov %p962_p2 }
  0x60   : > { %p964_p4 = pmov %p962_p2 }
  0x61   : > { %660 = dma.done.wait (%p963_p13), [#allocation6], 16  }
  0x62   : > { %662 = vsyncadd (%p964_p4), [#allocation6], 4294967280  ;;  %p965_p5 = pmov %p962_p2 }
  0x63   : > { %p966_p10 = pmov %p962_p2 }
  0x64   : > { %664 = dma.done.wait (%p965_p5), [#allocation9], 16  }
  0x65   : > { %666 = vsyncadd (%p966_p10), [#allocation9], 4294967280  ;;  %s887_s23 = sand.u32 1, %s681_s16   ;;  %p967_p8 = scmp.ne.s32.totalorder %s954_s21, 0 }
  0x66   : > { %s434_s29 = sshll.u32 %s887_s23, 4  ;;  %s223_s13 = scalar_lea.sflag [#allocation3], %s887_s23 }
  0x67   : > { %s226_s14 = scalar_lea.vmem [#allocation10], %s434_s29 }
  0x68   : > { %668 = dma.done.wait (%p967_p8), %s223_s13, 256  }
  0x69   : > { %670 = vsyncadd (%p967_p8), %s223_s13, 4294967040 }
  0x6a   : > { %231 = sfence }
  0x6b   : > { %s254_s20 = sld [smem:[#allocation7]]  ;;  %s436_s25 = sld [smem:[#allocation7 + $0x1]]  ;;  %v252_v0 = vld [vmem:[%s226_s14] sm:$0xff]  ;;  %v253_v1 = vld [vmem:[%s226_s14 + $0x8] sm:$0xff] }
  0x6c   : > { %s255_s24 = sld [smem:[#allocation8]]  ;;  %s437_s27 = sld [smem:[#allocation8 + $0x1]] }
  0x6d   : > { %s439_s28 = sld [smem:[#allocation7 + $0x2]]  ;;  %s256_s21 = sld [smem:[#allocation2]] }
  0x6e   : > { %s440_s26 = sld [smem:[#allocation8 + $0x2]]  ;;  %s438_s6 = sld [smem:[#allocation2 + $0x1]] }
  0x6f   : > { %s441_s9 = sld [smem:[#allocation2 + $0x2]]  ;;  %s251_s8 = scalar_lea.vmem [#allocation11], %s434_s29 }
  0x70   : > { %s317_s10 = sshll.u32 %s251_s8, 4  ;;  %s448_s11 = sshll.u32 %s742_s19, 8  ;;  %s900_s10 = int_to_ptr.vmem [resolvable:$true] %s317_s10 }
  0x71   : > { %v257_v2 = vstv %s254_s20  ;;  %v271_v6 = vstv %s436_s25  ;;  %s905_s14 = scalar_lea.hbm %s950_s4, %s448_s11  ;;  %s303_s20 = scalar_lea.sflag [#allocation4], %s887_s23 }
  0x72   : > { %v258_v3 = vmul.f32 %v257_v2, %v252_v0  ;;  %v260_v4 = vstv %s255_s24  ;;  %v259_v5 = vmul.f32 %v257_v2, %v253_v1  ;;  %v274_v7 = vstv %s437_s27  ;;  %s611_s29 = scalar_lea.vmem %s900_s10, 256  ;;  %p968_p3 = scmp.ne.s32.totalorder %s959_s7, 0 }
  0x73   : > { %v272_v9 = vmul.f32 %v271_v6, %v252_v0  ;;  %v287_v10 = vstv %s439_s28  ;;  %v273_v15 = vmul.f32 %v271_v6, %v253_v1  ;;  %v265_v20 = vstv %s256_s21  ;;  %p612_p0 = scmp.ne.s32.totalorder %s900_s10, %s611_s29  ;;  %s695_s19 = smov [#allocation11]  }
  0x74   : > { %v261_v8 = vsub.f32 %v258_v3, %v260_v4  ;;  %v288_v11 = vmul.f32 %v287_v10, %v252_v0  ;;  %v290_v12 = vstv %s440_s26  ;;  %v262_v13 = vsub.f32 %v259_v5, %v260_v4  ;;  %s615_s24 = sshll.u32 %s695_s19, 4  ;;  %s616_s24 = int_to_ptr.vmem [resolvable:$false] %s615_s24 }
  0x75   : > { %v275_v14 = vsub.f32 %v272_v9, %v274_v7  ;;  %v289_v16 = vmul.f32 %v287_v10, %v253_v1  ;;  %v276_v18 = vsub.f32 %v273_v15, %v274_v7  ;;  %v279_v22 = vstv %s438_s6  ;;  %p613_p7 = pnand %p612_p0, %p968_p3  ;;  %s617_s25 = scalar_lea.vmem %s616_s24, 512 }
  0x76   : > { %526 = vtanh.f32 %v261_v8  ;;  %v291_v17 = vsub.f32 %v288_v11, %v290_v12  ;;  %v295_v25 = vstv %s441_s9  ;;  %p618_p6 = scmp.lt.s32.totalorder %s900_s10, %s616_s24  ;;  %p619_p12 = scmp.lt.s32.totalorder %s617_s25, %s611_s29 }
  0x77   : > { %528 = vtanh.f32 %v262_v13  ;;  %v292_v19 = vsub.f32 %v289_v16, %v290_v12  ;;  %p614_p1 = pneg %p613_p7 }
  0x78   : > { %530 = vtanh.f32 %v275_v14  ;;  %p620_p11 = por %p619_p12, %p618_p6 }
  0x79   : > { %532 = vtanh.f32 %v291_v17 }
  0x7a   : > { %534 = vtanh.f32 %v276_v18  ;;  %p621_p9 = pnand %p620_p11, %p614_p1 }
  0x7b   : > { %536 = vtanh.f32 %v292_v19 }
  0x80   : > { %v527_v21 = vpop.eup %526 }
  0x81   : > { %v529_v23 = vpop.eup %528  ;;  %v266_v24 = vmul.f32 %v527_v21, %v265_v20 }
  0x82   : > { %v531_v26 = vpop.eup %530  ;;  %v267_v29 = vmul.f32 %v529_v23, %v265_v20 }
  0x83   : > { %v533_v27 = vpop.eup %532  ;;  %v280_v28 = vmul.f32 %v531_v26, %v279_v22 }
  0x84   : > { %v535_v30 = vpop.eup %534  ;;  %v296_v31 = vmul.f32 %v533_v27, %v295_v25 }
  0x85   : > { %v537_v32 = vpop.eup %536  ;;  %v282_v33 = vadd.f32 %v280_v28, %v266_v24  ;;  %v281_v34 = vmul.f32 %v535_v30, %v279_v22 }
  0x86   : > { %v297_v35 = vmul.f32 %v537_v32, %v295_v25 }
  0x87   : > { %v298_v36 = vadd.f32 %v296_v31, %v282_v33  ;;  %v283_v37 = vadd.f32 %v281_v34, %v267_v29 }
  0x89   : > { %300 = vst [vmem:[%s251_s8] sm:$0xff] %v298_v36  ;;  %v299_v38 = vadd.f32 %v297_v35, %v283_v37 }
  0x8b   : > { %301 = vst [vmem:[%s251_s8 + $0x8] sm:$0xff] %v299_v38 }
  0x8c   : > { %624 = shalt.err (!%p621_p9)
}
  0x8d   : > { %s625_s23 = scalar_lea.hbm %s905_s14, 256  ;;  %s629_s26 = scalar_lea.hbm %s950_s4, 768 }
  0x8e   : > { %p626_p2 = scmp.ne.s32.totalorder %s905_s14, %s625_s23  ;;  %p630_p5 = scmp.lt.u32.totalorder %s905_s14, %s950_s4 }
  0x8f   : > { %p631_p10 = scmp.lt.u32.totalorder %s629_s26, %s625_s23  ;;  %p633_p0 = scmp.lt.u32.totalorder %s625_s23, %s905_s14 }
  0x90   : > { %p627_p13 = pnand %p626_p2, %p968_p3 }
  0x91   : > { %p632_p8 = por %p631_p10, %p630_p5 }
  0x92   : > { %p628_p4 = pneg %p627_p13 }
  0x93   : > { %p634_p7 = por %p633_p0, %p632_p8 }
  0x95   : > { %p635_p1 = pnand %p634_p7, %p628_p4 }
  0x97   : > { %638 = shalt.err (!%p635_p1)
}
  0x98   : > { %463 = dma.vmem_to_hbm [thread:$0]  (%p968_p3), %s900_s10, 256, %s905_s14, %s303_s20  }
  0x99 PF: > { %p490_p6 = scmp.ge.s32.totalorder %s689_s18, 2  ;;  %s329_s9 = sand.u32 1, %s677_s15  }
  0x9a   : > { %p969_p12 = scmp.ne.s32.totalorder %s955_s22, 0  ;;  %s330_s8 = scalar_lea.sflag [#allocation4], %s329_s9 }
  0x9c   : > { %p480_p11 = pnand %p490_p6, %p969_p12 }
  0x9e   : > { %672 = dma.done.wait (!%p480_p11), %s330_s8, 256  }
  0x9f   : > { %674 = vsyncadd (!%p480_p11), %s330_s8, 4294967040  ;;  %p20_p9 = scmp.ge.s32.totalorder %s782_s5, 5   ;;  %s970_s15 = smov %s681_s16 }
  0xa0   : > { %s971_s16 = smov %s685_s17  ;;  %s972_s17 = smov %s826_s30 }
  0xa1   : > { %s973_s18 = smov %s782_s5  ;;  %22 = sbr.rel (!%p20_p9) target bundleno = 8 (0x8), region = 95 }
  0xa8   :  { %335 = vsyncpa [#allocation3], 1 }
  0xa9   :  { %337 = vsyncpa [#allocation3 + $0x1], 1 }
  0xaa   :  { %338 = vsyncpa [#allocation4], 1 }
  0xab   :  { %340 = vsyncpa [#allocation4 + $0x1], 1 }
  0xac   :  { %341 = vsyncpa [#allocation5], 1 }
  0xad   :  { %343 = vsyncpa [#allocation5 + $0x1], 1 }
  0xae   :  { %344 = vsyncpa [#allocation6], 1 }
  0xaf   :  { %346 = vsyncpa [#allocation6 + $0x1], 1 }
  0xb0   :  { %347 = vsyncpa [#allocation9], 1 }

</bundles_post_ra>
